<compile_context>
chip_gen: v7x
topology: tpu7x:2x2x1
jax: 0.10.0
libtpu: 0.0.40
codegen_flags: <defaults>
</compile_context>

<pallas_src>
import functools
import math

import jax
import jax.numpy as jnp
from jax import lax
from jax.experimental import pallas as pl
from jax.experimental.pallas import tpu as pltpu

NEG_HALF_LOG_2PI = -0.5 * math.log(2.0 * math.pi)


def _softplus_scalar(x: float) -> float:
    return math.log(1.0 + math.exp(x))


def _round_up(n: int, m: int) -> int:
    return ((n + m - 1) // m) * m


def _pad2(a, rows, cols, fill=0.0):
    return jnp.pad(a, ((0, rows - a.shape[0]), (0, cols - a.shape[1])),
                   constant_values=fill)


# --------------------------------------------------------------------------------------
# Fused 3-layer BBB kernel
# --------------------------------------------------------------------------------------
def fused_bbb_mlp_kernel(
    x_ref,
    w1_ref, b1_ref, n1_ref,
    w2_ref, b2_ref, n2_ref,
    w3_ref, b3_ref, n3_ref,
    out_ref, kl_ref,
    *, prior_var: float, hid_p: int, out_p: int,
    n_hidden: int, n_output: int, batch: int, tb: int):
    # Rows of this batch tile that correspond to real (unpadded) examples.
    row0 = pl.program_id(0) * tb
    row_ids = row0 + lax.broadcasted_iota(jnp.int32, (tb, 1), 0)
    row_mask = row_ids < batch                                    # (tb, 1) bool

    def bbb_layer(h, w_ref, b_ref, n_ref, n_pad, n_valid):
        # h: (tb, K) f32.  w_ref: (K, 2*n_pad) bf16 = [W_mean | softplus(W_rho)^2].
        # b_ref: (1, 2*n_pad) f32 = [b_mean | softplus(b_rho)^2].  n_ref: (tb, n_pad) bf16.
        h_bf = h.astype(jnp.bfloat16)              # MXU operand
        h2 = h * h                                 # f32 (used for prior_row too)
        h2_bf = h2.astype(jnp.bfloat16)            # MXU operand
        wm = w_ref[:, :n_pad]                      # static, lane-aligned slices (free)
        wv = w_ref[:, n_pad:]
        bm = b_ref[:, :n_pad]
        bv = b_ref[:, n_pad:]
        noise = n_ref[...].astype(jnp.float32)

        z_mean = jnp.dot(h_bf, wm, preferred_element_type=jnp.float32) + bm
        z_var = jnp.dot(h2_bf, wv, preferred_element_type=jnp.float32) + bv  # > 0 on valid cols
        z = z_mean + jnp.sqrt(z_var) * noise

        # mm(h^2, prior_var * ones) == rowsum(h^2) * prior_var (identical per column).
        prior_row = jnp.sum(h2, axis=1, keepdims=True) * prior_var + prior_var  # (tb, 1)
        inv_prior = 1.0 / prior_row                # exact reciprocal; only a (tb,1) column
        # d = z - z_mean = sqrt(z_var)*noise  =>
        #   logN(z; m, std) - logN(z; m, prior_std)
        #     = 0.5*(log(prior_var_row) - log(z_var) + noise^2*(z_var/prior_var_row - 1))
        kl_elem = 0.5 * (jnp.log(prior_row) - jnp.log(z_var)
                         + (noise * noise) * (z_var * inv_prior - 1.0))
        mask = row_mask
        if n_valid != n_pad:                       # explicit mask: padded cols -> exactly 0
            col_ids = lax.broadcasted_iota(jnp.int32, (tb, n_pad), 1)
            mask = jnp.logical_and(row_mask, col_ids < n_valid)
        kl = jnp.sum(jnp.where(mask, kl_elem, 0.0))
        return z, kl

    x = x_ref[...].astype(jnp.float32)
    z1, kl1 = bbb_layer(x, w1_ref, b1_ref, n1_ref, hid_p, n_hidden)
    a1 = jnp.maximum(z1, 0.0)
    z2, kl2 = bbb_layer(a1, w2_ref, b2_ref, n2_ref, hid_p, n_hidden)
    a2 = jnp.maximum(z2, 0.0)
    z3, kl3 = bbb_layer(a2, w3_ref, b3_ref, n3_ref, out_p, n_output)

    # Softmax only over the real output columns (padded lanes -> probability 0);
    # one row reciprocal instead of a per-element divide.
    if n_output != out_p:
        col_ids = lax.broadcasted_iota(jnp.int32, z3.shape, 1)
        z3 = jnp.where(col_ids < n_output, z3, -jnp.inf)
    z_max = jnp.max(z3, axis=-1, keepdims=True)
    e = jnp.exp(z3 - z_max)
    denom = jnp.sum(e, axis=-1, keepdims=True)
    out_ref[...] = (e * pl.reciprocal(denom, approx=False)).astype(out_ref.dtype)

    # Lane-dense scalar emit: broadcast the tile KL over a full (1, 8, 128) block.
    kl_ref[...] = jnp.full(kl_ref.shape, kl1 + kl2 + kl3, dtype=jnp.float32)


# --------------------------------------------------------------------------------------
# Wrapper: padding, softplus hoisting, bf16 streaming, pallas_call
# --------------------------------------------------------------------------------------
def mlp_forward(x, params_list, noises, prior_var, *,
                batch_tile=256, vmem_limit_bytes=None, single_buffer_weights=False):
    """MLP.forward(x, mode='forward') -> (softmax_probs (B, n_output), net_kl scalar)."""
    B, n_in = x.shape
    hidden = params_list[0][0].shape[1]
    n_out = params_list[2][0].shape[1]
    prior_var = float(prior_var)

    # Feature dims padded to lane-dense multiples of 128 (every matmul K/N dim and
    # every output store is unmasked).  Batch padded to 16 (bf16 sublane packing).
    in_p = _round_up(n_in, 128)
    hid_p = _round_up(hidden, 128)
    out_p = _round_up(n_out, 128)

    SUB = 16
    b_sub = _round_up(B, SUB)
    tb = min(_round_up(batch_tile, SUB), b_sub)
    # v7x megacore: ensure >= 2 batch tiles whenever the batch permits.
    if b_sub >= 2 * SUB and b_sub // tb < 2:
        tb = _round_up((b_sub + 1) // 2, SUB)
    b_pad = _round_up(b_sub, tb)
    num_tiles = b_pad // tb

    def prep(params, k_p, n_p):
        wm, wr, bm, br = params
        wv = jnp.square(jax.nn.softplus(wr))   # softplus(W_rho)^2 hoisted out of kernel
        bv = jnp.square(jax.nn.softplus(br))   # softplus(b_rho)^2
        # [W_mean | W_var] concatenated along N (one bf16 input stream per layer).
        w_cat = jnp.concatenate(
            [_pad2(wm.astype(jnp.float32), k_p, n_p, 0.0),
             _pad2(wv.astype(jnp.float32), k_p, n_p, 0.0)],
            axis=1).astype(jnp.bfloat16)
        # Padded variance-bias columns = prior_var keep log(z_var) finite there; the
        # padded columns are explicitly masked out of the KL inside the kernel.
        b_cat = jnp.concatenate(
            [_pad2(bm.astype(jnp.float32), 1, n_p, 0.0),
             _pad2(bv.astype(jnp.float32), 1, n_p, prior_var)],
            axis=1)                             # biases stay f32
        return w_cat, b_cat

    w1, b1 = prep(params_list[0], in_p, hid_p)
    w2, b2 = prep(params_list[1], hid_p, hid_p)
    w3, b3 = prep(params_list[2], hid_p, out_p)

    # Batch-sized HBM streams in bf16 (halves the dominant per-row DMA traffic).
    x_p = _pad2(x.astype(jnp.bfloat16), b_pad, in_p, 0.0)
    n1_p = _pad2(noises[0].astype(jnp.bfloat16), b_pad, hid_p, 0.0)
    n2_p = _pad2(noises[1].astype(jnp.bfloat16), b_pad, hid_p, 0.0)
    n3_p = _pad2(noises[2].astype(jnp.bfloat16), b_pad, out_p, 0.0)
    # TODO(synk): review also suggested generating the Gaussian noise in-kernel with
    # pltpu.prng_* to drop 3 HBM streams entirely; kept as explicit inputs so the
    # result stays checkable against a reference sharing the same noise sample.

    kernel = functools.partial(
        fused_bbb_mlp_kernel, prior_var=prior_var, hid_p=hid_p, out_p=out_p,
        n_hidden=hidden, n_output=n_out, batch=B, tb=tb)

    batch_map = lambda i: (i, 0)
    const_map = lambda i: (0, 0)   # weights fetched once, resident across the grid

    def const_spec(shape):
        if single_buffer_weights:   # v7x (64 MiB VMEM): don't double-buffer constants
            return pl.BlockSpec(shape, const_map, pipeline_mode=pl.Buffered(1))
        return pl.BlockSpec(shape, const_map)

    cp_kwargs = dict(dimension_semantics=("parallel",))
    if vmem_limit_bytes is not None:   # v5e scoped default is only 16 MiB
        cp_kwargs["vmem_limit_bytes"] = int(vmem_limit_bytes)

    out_pad, kl_tiles = pl.pallas_call(
        kernel,
        grid=(num_tiles,),
        in_specs=[
            pl.BlockSpec((tb, in_p), batch_map),        # x (bf16)
            const_spec((in_p, 2 * hid_p)),              # [W1_mean | W1_var] (bf16)
            const_spec((1, 2 * hid_p)),                 # [b1_mean | b1_var] (f32)
            pl.BlockSpec((tb, hid_p), batch_map),       # noise 1 (bf16)
            const_spec((hid_p, 2 * hid_p)),             # [W2_mean | W2_var]
            const_spec((1, 2 * hid_p)),                 # [b2_mean | b2_var]
            pl.BlockSpec((tb, hid_p), batch_map),       # noise 2
            const_spec((hid_p, 2 * out_p)),             # [W3_mean | W3_var]
            const_spec((1, 2 * out_p)),                 # [b3_mean | b3_var]
            pl.BlockSpec((tb, out_p), batch_map),       # noise 3
        ],
        out_specs=(
            pl.BlockSpec((tb, out_p), batch_map),               # softmax probs (f32)
            pl.BlockSpec((1, 8, 128), lambda i: (i, 0, 0)),     # per-tile KL (lane dense)
        ),
        out_shape=(
            jax.ShapeDtypeStruct((b_pad, out_p), jnp.float32),
            jax.ShapeDtypeStruct((num_tiles, 8, 128), jnp.float32),
        ),
        compiler_params=pltpu.CompilerParams(**cp_kwargs),
    )(x_p, w1, b1, n1_p, w2, b2, n2_p, w3, b3, n3_p)

    out = out_pad[:B, :n_out]
    net_kl = jnp.sum(kl_tiles[:, 0, 0])
    return out, net_kl


# --------------------------------------------------------------------------------------
# Pure-JAX references (PyTorch formulas; optional emulation of the kernel's bf16 casts)
# --------------------------------------------------------------------------------------
def mlp_forward_ref(x, params_list, noises, prior_var, *, mixed=False):
    def cast_stream(a):
        return a.astype(jnp.bfloat16).astype(jnp.float32) if mixed else a

    activations = ['relu', 'relu', 'softmax']
    net_kl = jnp.float32(0.0)
    h = cast_stream(x.astype(jnp.float32))
    for (wm, wr, bm, br), noise, act in zip(params_list, noises, activations):
        noise = cast_stream(noise.astype(jnp.float32))
        sp_w = jax.nn.softplus(wr)
        sp_b = jax.nn.softplus(br)
        wv = sp_w * sp_w
        bv = sp_b * sp_b
        if mixed:
            wm_d = wm.astype(jnp.bfloat16)
            wv_d = wv.astype(jnp.bfloat16)
            h_d = h.astype(jnp.bfloat16)
            h2_d = (h * h).astype(jnp.bfloat16)
        else:
            wm_d, wv_d, h_d, h2_d = wm, wv, h, h * h
        z_mean = jnp.dot(h_d, wm_d, preferred_element_type=jnp.float32) + bm
        z_var = jnp.dot(h2_d, wv_d, preferred_element_type=jnp.float32) + bv
        z_std = jnp.sqrt(z_var)
        z = z_mean + z_std * noise
        prior_row = jnp.sum(h * h, axis=1, keepdims=True) * prior_var + prior_var
        prior_std = jnp.sqrt(prior_row)
        d = z - z_mean
        lp1 = NEG_HALF_LOG_2PI - jnp.log(z_std) - 0.5 * d * d / (z_std * z_std)
        lp2 = NEG_HALF_LOG_2PI - jnp.log(prior_std) - 0.5 * d * d / (prior_std * prior_std)
        net_kl = net_kl + jnp.sum(lp1 - lp2)
        h = jnp.maximum(z, 0.0) if act == 'relu' else jax.nn.softmax(z, axis=-1)
    return h, net_kl


def init_mlp_params(key, n_input, hidden_size, n_output,
                    mean_scale=0.1, rho_center=-4.0, rho_scale=0.1):
    # MLPLayer.__init__ sets W_mean=prior_mean and W_rho=prior_rho everywhere, which
    # makes posterior == prior and the KL exactly 0; perturb deterministically so the
    # KL path is actually exercised.
    def layer(k, n_in, n_out):
        k1, k2, k3, k4 = jax.random.split(k, 4)
        return (mean_scale * jax.random.normal(k1, (n_in, n_out), jnp.float32),
                rho_center + rho_scale * jax.random.normal(k2, (n_in, n_out), jnp.float32),
                mean_scale * jax.random.normal(k3, (1, n_out), jnp.float32),
                rho_center + rho_scale * jax.random.normal(k4, (1, n_out), jnp.float32))
    ka, kb, kc = jax.random.split(key, 3)
    return [layer(ka, n_input, hidden_size),
            layer(kb, hidden_size, hidden_size),
            layer(kc, hidden_size, n_output)]


if __name__ == "__main__":
    B, n_input, hidden_size, n_output = 8, 64, 32, 16
    prior_rho = -3.0
    prior_var = _softplus_scalar(prior_rho) ** 2   # MLPLayer.prior_var

    key = jax.random.PRNGKey(0)
    kx, kp, k1, k2, k3 = jax.random.split(key, 5)
    x = jax.random.normal(kx, (B, n_input), jnp.float32)
    params_list = init_mlp_params(kp, n_input, hidden_size, n_output)

    # TODO(synk): PyTorch samples noise via np.random.choice from a pre-drawn gaussian
    # block; deterministic standard-normal noise from PRNGKey(0) is supplied instead.
    noises = [jax.random.normal(k1, (B, hidden_size), jnp.float32),
              jax.random.normal(k2, (B, hidden_size), jnp.float32),
              jax.random.normal(k3, (B, n_output), jnp.float32)]

    fwd = jax.jit(functools.partial(mlp_forward, prior_var=prior_var))
    out, net_kl = fwd(x, params_list, noises)
    jax.block_until_ready((out, net_kl))

    # Mixed-precision reference (same bf16 casts as the kernel) -> tight tolerance.
    out_mx, kl_mx = mlp_forward_ref(x, params_list, noises, prior_var, mixed=True)
    # Full-f32 reference (literal PyTorch formulas) -> loose tolerance bounding the
    # bf16-stream / bf16-MXU error.
    out_f32, kl_f32 = mlp_forward_ref(x, params_list, noises, prior_var, mixed=False)
    jax.block_until_ready((out_mx, kl_mx, out_f32, kl_f32))

    assert out.shape == (B, n_output) and out.dtype == jnp.float32
    assert bool(jnp.all(jnp.isfinite(out))) and bool(jnp.isfinite(net_kl))
    assert jnp.allclose(out, out_mx, atol=2e-3, rtol=2e-3), "output mismatch (mixed ref)"
    assert abs(float(net_kl) - float(kl_mx)) <= 1e-3 * abs(float(kl_mx)) + 0.1, \
        "KL mismatch (mixed ref)"
    assert jnp.allclose(out, out_f32, atol=3e-2, rtol=3e-2), "output mismatch (f32 ref)"
    assert abs(float(net_kl) - float(kl_f32)) <= 2e-2 * abs(float(kl_f32)) + 2.0, \
        "KL mismatch (f32 ref)"

    print("KERNEL_OK")
</pallas_src>

<mosaic_0001>
module attributes {stable_mosaic.version = 11 : i64} {
  func.func @fused_bbb_mlp_kernel(%arg0: i32, %arg1: memref<16x128xbf16, #tpu.memory_space<vmem>>, %arg2: memref<128x256xbf16, #tpu.memory_space<vmem>>, %arg3: memref<1x256xf32, #tpu.memory_space<vmem>>, %arg4: memref<16x128xbf16, #tpu.memory_space<vmem>>, %arg5: memref<128x256xbf16, #tpu.memory_space<vmem>>, %arg6: memref<1x256xf32, #tpu.memory_space<vmem>>, %arg7: memref<16x128xbf16, #tpu.memory_space<vmem>>, %arg8: memref<128x256xbf16, #tpu.memory_space<vmem>>, %arg9: memref<1x256xf32, #tpu.memory_space<vmem>>, %arg10: memref<16x128xbf16, #tpu.memory_space<vmem>>, %arg11: memref<16x128xf32, #tpu.memory_space<vmem>>, %arg12: memref<1x8x128xf32, #tpu.memory_space<vmem>>) attributes {dimension_semantics = [#tpu.dimension_semantics<parallel>], iteration_bounds = array<i64: 1>, scalar_prefetch = 0 : i64, scratch_operands = 0 : i64, tpu.core_type = #tpu.core_type<tc>, window_params = [{transform_indices = @transform_0, window_bounds = array<i64: 16, 128>}, {pipeline_mode = #tpu.pipeline_mode<synchronous>, transform_indices = @transform_1, window_bounds = array<i64: 128, 256>}, {pipeline_mode = #tpu.pipeline_mode<synchronous>, transform_indices = @transform_2, window_bounds = array<i64: 1, 256>}, {transform_indices = @transform_3, window_bounds = array<i64: 16, 128>}, {pipeline_mode = #tpu.pipeline_mode<synchronous>, transform_indices = @transform_4, window_bounds = array<i64: 128, 256>}, {pipeline_mode = #tpu.pipeline_mode<synchronous>, transform_indices = @transform_5, window_bounds = array<i64: 1, 256>}, {transform_indices = @transform_6, window_bounds = array<i64: 16, 128>}, {pipeline_mode = #tpu.pipeline_mode<synchronous>, transform_indices = @transform_7, window_bounds = array<i64: 128, 256>}, {pipeline_mode = #tpu.pipeline_mode<synchronous>, transform_indices = @transform_8, window_bounds = array<i64: 1, 256>}, {transform_indices = @transform_9, window_bounds = array<i64: 16, 128>}, {transform_indices = @transform_10, window_bounds = array<i64: 16, 128>}, {transform_indices = @transform_11, window_bounds = array<i64: 1, 8, 128>}]} {
    %c16_i32 = arith.constant 16 : i32
    %0 = arith.muli %arg0, %c16_i32 : i32
    %1 = tpu.iota {dimensions = array<i32: 0>} : vector<16x1xi32>
    %2 = vector.broadcast %0 : i32 to vector<16x1xi32>
    %3 = arith.addi %2, %1 : vector<16x1xi32>
    %c8_i32 = arith.constant 8 : i32
    %4 = vector.broadcast %c8_i32 : i32 to vector<16x1xi32>
    %5 = arith.cmpi slt, %3, %4 : vector<16x1xi32>
    %c0 = arith.constant 0 : index
    %c0_0 = arith.constant 0 : index
    %6 = vector.load %arg1[%c0, %c0_0] : memref<16x128xbf16, #tpu.memory_space<vmem>>, vector<16x128xbf16>
    %7 = arith.extf %6 : vector<16x128xbf16> to vector<16x128xf32>
    %8 = arith.truncf %7 : vector<16x128xf32> to vector<16x128xbf16>
    %9 = arith.mulf %7, %7 : vector<16x128xf32>
    %10 = arith.truncf %9 : vector<16x128xf32> to vector<16x128xbf16>
    %c0_1 = arith.constant 0 : index
    %c0_2 = arith.constant 0 : index
    %11 = vector.load %arg2[%c0_1, %c0_2] : memref<128x256xbf16, #tpu.memory_space<vmem>>, vector<128x128xbf16>
    %c0_3 = arith.constant 0 : index
    %c128 = arith.constant 128 : index
    %12 = vector.load %arg2[%c0_3, %c128] : memref<128x256xbf16, #tpu.memory_space<vmem>>, vector<128x128xbf16>
    %c0_4 = arith.constant 0 : index
    %c0_5 = arith.constant 0 : index
    %13 = vector.load %arg3[%c0_4, %c0_5] : memref<1x256xf32, #tpu.memory_space<vmem>>, vector<1x128xf32>
    %c0_6 = arith.constant 0 : index
    %c128_7 = arith.constant 128 : index
    %14 = vector.load %arg3[%c0_6, %c128_7] : memref<1x256xf32, #tpu.memory_space<vmem>>, vector<1x128xf32>
    %c0_8 = arith.constant 0 : index
    %c0_9 = arith.constant 0 : index
    %15 = vector.load %arg4[%c0_8, %c0_9] : memref<16x128xbf16, #tpu.memory_space<vmem>>, vector<16x128xbf16>
    %16 = arith.extf %15 : vector<16x128xbf16> to vector<16x128xf32>
    %cst = arith.constant dense<0.000000e+00> : vector<16x128xf32>
    %17 = tpu.matmul %8, %11, %cst {dimension_numbers = #tpu.dot_dimension_numbers<[1], [0], [0], [1], [0, 0, 1, 1], [], []>} : vector<16x128xbf16>, vector<128x128xbf16>, vector<16x128xf32> -> vector<16x128xf32>
    %18 = vector.broadcast %13 : vector<1x128xf32> to vector<16x128xf32>
    %19 = arith.addf %17, %18 : vector<16x128xf32>
    %cst_10 = arith.constant dense<0.000000e+00> : vector<16x128xf32>
    %20 = tpu.matmul %10, %12, %cst_10 {dimension_numbers = #tpu.dot_dimension_numbers<[1], [0], [0], [1], [0, 0, 1, 1], [], []>} : vector<16x128xbf16>, vector<128x128xbf16>, vector<16x128xf32> -> vector<16x128xf32>
    %21 = vector.broadcast %14 : vector<1x128xf32> to vector<16x128xf32>
    %22 = arith.addf %20, %21 : vector<16x128xf32>
    %23 = math.sqrt %22 : vector<16x128xf32>
    %24 = arith.mulf %23, %16 : vector<16x128xf32>
    %25 = arith.addf %19, %24 : vector<16x128xf32>
    %cst_11 = arith.constant dense<0.000000e+00> : vector<16xf32>
    %26 = vector.multi_reduction <add>, %9, %cst_11 [1] : vector<16x128xf32> to vector<16xf32>
    %27 = vector.shape_cast %26 : vector<16xf32> to vector<16x1xf32>
    %cst_12 = arith.constant 0.00236073066 : f32
    %28 = vector.broadcast %cst_12 : f32 to vector<16x1xf32>
    %29 = arith.mulf %27, %28 : vector<16x1xf32>
    %cst_13 = arith.constant 0.00236073066 : f32
    %30 = vector.broadcast %cst_13 : f32 to vector<16x1xf32>
    %31 = arith.addf %29, %30 : vector<16x1xf32>
    %cst_14 = arith.constant 1.000000e+00 : f32
    %32 = vector.broadcast %cst_14 : f32 to vector<16x1xf32>
    %33 = arith.divf %32, %31 : vector<16x1xf32>
    %34 = math.log %31 : vector<16x1xf32>
    %35 = math.log %22 : vector<16x128xf32>
    %36 = vector.broadcast %34 : vector<16x1xf32> to vector<16x128xf32>
    %37 = arith.subf %36, %35 : vector<16x128xf32>
    %38 = arith.mulf %16, %16 : vector<16x128xf32>
    %39 = vector.broadcast %33 : vector<16x1xf32> to vector<16x128xf32>
    %40 = arith.mulf %22, %39 : vector<16x128xf32>
    %cst_15 = arith.constant 1.000000e+00 : f32
    %41 = vector.broadcast %cst_15 : f32 to vector<16x128xf32>
    %42 = arith.subf %40, %41 : vector<16x128xf32>
    %43 = arith.mulf %38, %42 : vector<16x128xf32>
    %44 = arith.addf %37, %43 : vector<16x128xf32>
    %cst_16 = arith.constant 5.000000e-01 : f32
    %45 = vector.broadcast %cst_16 : f32 to vector<16x128xf32>
    %46 = arith.mulf %45, %44 : vector<16x128xf32>
    %47 = tpu.iota {dimensions = array<i32: 1>} : vector<16x128xi32>
    %c32_i32 = arith.constant 32 : i32
    %48 = vector.broadcast %c32_i32 : i32 to vector<16x128xi32>
    %49 = arith.cmpi slt, %47, %48 : vector<16x128xi32>
    %50 = vector.broadcast %5 : vector<16x1xi1> to vector<16x128xi1>
    %51 = arith.andi %50, %49 : vector<16x128xi1>
    %cst_17 = arith.constant 0.000000e+00 : f32
    %52 = vector.broadcast %cst_17 : f32 to vector<16x128xf32>
    %53 = arith.select %51, %46, %52 : vector<16x128xi1>, vector<16x128xf32>
    %54 = vector.shape_cast %53 : vector<16x128xf32> to vector<1x16x128xf32>
    %cst_18 = arith.constant dense<0.000000e+00> : vector<1xf32>
    %55 = vector.multi_reduction <add>, %54, %cst_18 [1, 2] : vector<1x16x128xf32> to vector<1xf32>
    %56 = vector.shape_cast %55 : vector<1xf32> to vector<1x1x1xf32>
    %57 = vector.extract %56[0, 0, 0] : f32 from vector<1x1x1xf32>
    %cst_19 = arith.constant 0.000000e+00 : f32
    %58 = vector.broadcast %cst_19 : f32 to vector<16x128xf32>
    %59 = arith.maximumf %25, %58 : vector<16x128xf32>
    %60 = arith.truncf %59 : vector<16x128xf32> to vector<16x128xbf16>
    %61 = arith.mulf %59, %59 : vector<16x128xf32>
    %62 = arith.truncf %61 : vector<16x128xf32> to vector<16x128xbf16>
    %c0_20 = arith.constant 0 : index
    %c0_21 = arith.constant 0 : index
    %63 = vector.load %arg5[%c0_20, %c0_21] : memref<128x256xbf16, #tpu.memory_space<vmem>>, vector<128x128xbf16>
    %c0_22 = arith.constant 0 : index
    %c128_23 = arith.constant 128 : index
    %64 = vector.load %arg5[%c0_22, %c128_23] : memref<128x256xbf16, #tpu.memory_space<vmem>>, vector<128x128xbf16>
    %c0_24 = arith.constant 0 : index
    %c0_25 = arith.constant 0 : index
    %65 = vector.load %arg6[%c0_24, %c0_25] : memref<1x256xf32, #tpu.memory_space<vmem>>, vector<1x128xf32>
    %c0_26 = arith.constant 0 : index
    %c128_27 = arith.constant 128 : index
    %66 = vector.load %arg6[%c0_26, %c128_27] : memref<1x256xf32, #tpu.memory_space<vmem>>, vector<1x128xf32>
    %c0_28 = arith.constant 0 : index
    %c0_29 = arith.constant 0 : index
    %67 = vector.load %arg7[%c0_28, %c0_29] : memref<16x128xbf16, #tpu.memory_space<vmem>>, vector<16x128xbf16>
    %68 = arith.extf %67 : vector<16x128xbf16> to vector<16x128xf32>
    %cst_30 = arith.constant dense<0.000000e+00> : vector<16x128xf32>
    %69 = tpu.matmul %60, %63, %cst_30 {dimension_numbers = #tpu.dot_dimension_numbers<[1], [0], [0], [1], [0, 0, 1, 1], [], []>} : vector<16x128xbf16>, vector<128x128xbf16>, vector<16x128xf32> -> vector<16x128xf32>
    %70 = vector.broadcast %65 : vector<1x128xf32> to vector<16x128xf32>
    %71 = arith.addf %69, %70 : vector<16x128xf32>
    %cst_31 = arith.constant dense<0.000000e+00> : vector<16x128xf32>
    %72 = tpu.matmul %62, %64, %cst_31 {dimension_numbers = #tpu.dot_dimension_numbers<[1], [0], [0], [1], [0, 0, 1, 1], [], []>} : vector<16x128xbf16>, vector<128x128xbf16>, vector<16x128xf32> -> vector<16x128xf32>
    %73 = vector.broadcast %66 : vector<1x128xf32> to vector<16x128xf32>
    %74 = arith.addf %72, %73 : vector<16x128xf32>
    %75 = math.sqrt %74 : vector<16x128xf32>
    %76 = arith.mulf %75, %68 : vector<16x128xf32>
    %77 = arith.addf %71, %76 : vector<16x128xf32>
    %cst_32 = arith.constant dense<0.000000e+00> : vector<16xf32>
    %78 = vector.multi_reduction <add>, %61, %cst_32 [1] : vector<16x128xf32> to vector<16xf32>
    %79 = vector.shape_cast %78 : vector<16xf32> to vector<16x1xf32>
    %cst_33 = arith.constant 0.00236073066 : f32
    %80 = vector.broadcast %cst_33 : f32 to vector<16x1xf32>
    %81 = arith.mulf %79, %80 : vector<16x1xf32>
    %cst_34 = arith.constant 0.00236073066 : f32
    %82 = vector.broadcast %cst_34 : f32 to vector<16x1xf32>
    %83 = arith.addf %81, %82 : vector<16x1xf32>
    %cst_35 = arith.constant 1.000000e+00 : f32
    %84 = vector.broadcast %cst_35 : f32 to vector<16x1xf32>
    %85 = arith.divf %84, %83 : vector<16x1xf32>
    %86 = math.log %83 : vector<16x1xf32>
    %87 = math.log %74 : vector<16x128xf32>
    %88 = vector.broadcast %86 : vector<16x1xf32> to vector<16x128xf32>
    %89 = arith.subf %88, %87 : vector<16x128xf32>
    %90 = arith.mulf %68, %68 : vector<16x128xf32>
    %91 = vector.broadcast %85 : vector<16x1xf32> to vector<16x128xf32>
    %92 = arith.mulf %74, %91 : vector<16x128xf32>
    %cst_36 = arith.constant 1.000000e+00 : f32
    %93 = vector.broadcast %cst_36 : f32 to vector<16x128xf32>
    %94 = arith.subf %92, %93 : vector<16x128xf32>
    %95 = arith.mulf %90, %94 : vector<16x128xf32>
    %96 = arith.addf %89, %95 : vector<16x128xf32>
    %cst_37 = arith.constant 5.000000e-01 : f32
    %97 = vector.broadcast %cst_37 : f32 to vector<16x128xf32>
    %98 = arith.mulf %97, %96 : vector<16x128xf32>
    %99 = tpu.iota {dimensions = array<i32: 1>} : vector<16x128xi32>
    %c32_i32_38 = arith.constant 32 : i32
    %100 = vector.broadcast %c32_i32_38 : i32 to vector<16x128xi32>
    %101 = arith.cmpi slt, %99, %100 : vector<16x128xi32>
    %102 = vector.broadcast %5 : vector<16x1xi1> to vector<16x128xi1>
    %103 = arith.andi %102, %101 : vector<16x128xi1>
    %cst_39 = arith.constant 0.000000e+00 : f32
    %104 = vector.broadcast %cst_39 : f32 to vector<16x128xf32>
    %105 = arith.select %103, %98, %104 : vector<16x128xi1>, vector<16x128xf32>
    %106 = vector.shape_cast %105 : vector<16x128xf32> to vector<1x16x128xf32>
    %cst_40 = arith.constant dense<0.000000e+00> : vector<1xf32>
    %107 = vector.multi_reduction <add>, %106, %cst_40 [1, 2] : vector<1x16x128xf32> to vector<1xf32>
    %108 = vector.shape_cast %107 : vector<1xf32> to vector<1x1x1xf32>
    %109 = vector.extract %108[0, 0, 0] : f32 from vector<1x1x1xf32>
    %cst_41 = arith.constant 0.000000e+00 : f32
    %110 = vector.broadcast %cst_41 : f32 to vector<16x128xf32>
    %111 = arith.maximumf %77, %110 : vector<16x128xf32>
    %112 = arith.truncf %111 : vector<16x128xf32> to vector<16x128xbf16>
    %113 = arith.mulf %111, %111 : vector<16x128xf32>
    %114 = arith.truncf %113 : vector<16x128xf32> to vector<16x128xbf16>
    %c0_42 = arith.constant 0 : index
    %c0_43 = arith.constant 0 : index
    %115 = vector.load %arg8[%c0_42, %c0_43] : memref<128x256xbf16, #tpu.memory_space<vmem>>, vector<128x128xbf16>
    %c0_44 = arith.constant 0 : index
    %c128_45 = arith.constant 128 : index
    %116 = vector.load %arg8[%c0_44, %c128_45] : memref<128x256xbf16, #tpu.memory_space<vmem>>, vector<128x128xbf16>
    %c0_46 = arith.constant 0 : index
    %c0_47 = arith.constant 0 : index
    %117 = vector.load %arg9[%c0_46, %c0_47] : memref<1x256xf32, #tpu.memory_space<vmem>>, vector<1x128xf32>
    %c0_48 = arith.constant 0 : index
    %c128_49 = arith.constant 128 : index
    %118 = vector.load %arg9[%c0_48, %c128_49] : memref<1x256xf32, #tpu.memory_space<vmem>>, vector<1x128xf32>
    %c0_50 = arith.constant 0 : index
    %c0_51 = arith.constant 0 : index
    %119 = vector.load %arg10[%c0_50, %c0_51] : memref<16x128xbf16, #tpu.memory_space<vmem>>, vector<16x128xbf16>
    %120 = arith.extf %119 : vector<16x128xbf16> to vector<16x128xf32>
    %cst_52 = arith.constant dense<0.000000e+00> : vector<16x128xf32>
    %121 = tpu.matmul %112, %115, %cst_52 {dimension_numbers = #tpu.dot_dimension_numbers<[1], [0], [0], [1], [0, 0, 1, 1], [], []>} : vector<16x128xbf16>, vector<128x128xbf16>, vector<16x128xf32> -> vector<16x128xf32>
    %122 = vector.broadcast %117 : vector<1x128xf32> to vector<16x128xf32>
    %123 = arith.addf %121, %122 : vector<16x128xf32>
    %cst_53 = arith.constant dense<0.000000e+00> : vector<16x128xf32>
    %124 = tpu.matmul %114, %116, %cst_53 {dimension_numbers = #tpu.dot_dimension_numbers<[1], [0], [0], [1], [0, 0, 1, 1], [], []>} : vector<16x128xbf16>, vector<128x128xbf16>, vector<16x128xf32> -> vector<16x128xf32>
    %125 = vector.broadcast %118 : vector<1x128xf32> to vector<16x128xf32>
    %126 = arith.addf %124, %125 : vector<16x128xf32>
    %127 = math.sqrt %126 : vector<16x128xf32>
    %128 = arith.mulf %127, %120 : vector<16x128xf32>
    %129 = arith.addf %123, %128 : vector<16x128xf32>
    %cst_54 = arith.constant dense<0.000000e+00> : vector<16xf32>
    %130 = vector.multi_reduction <add>, %113, %cst_54 [1] : vector<16x128xf32> to vector<16xf32>
    %131 = vector.shape_cast %130 : vector<16xf32> to vector<16x1xf32>
    %cst_55 = arith.constant 0.00236073066 : f32
    %132 = vector.broadcast %cst_55 : f32 to vector<16x1xf32>
    %133 = arith.mulf %131, %132 : vector<16x1xf32>
    %cst_56 = arith.constant 0.00236073066 : f32
    %134 = vector.broadcast %cst_56 : f32 to vector<16x1xf32>
    %135 = arith.addf %133, %134 : vector<16x1xf32>
    %cst_57 = arith.constant 1.000000e+00 : f32
    %136 = vector.broadcast %cst_57 : f32 to vector<16x1xf32>
    %137 = arith.divf %136, %135 : vector<16x1xf32>
    %138 = math.log %135 : vector<16x1xf32>
    %139 = math.log %126 : vector<16x128xf32>
    %140 = vector.broadcast %138 : vector<16x1xf32> to vector<16x128xf32>
    %141 = arith.subf %140, %139 : vector<16x128xf32>
    %142 = arith.mulf %120, %120 : vector<16x128xf32>
    %143 = vector.broadcast %137 : vector<16x1xf32> to vector<16x128xf32>
    %144 = arith.mulf %126, %143 : vector<16x128xf32>
    %cst_58 = arith.constant 1.000000e+00 : f32
    %145 = vector.broadcast %cst_58 : f32 to vector<16x128xf32>
    %146 = arith.subf %144, %145 : vector<16x128xf32>
    %147 = arith.mulf %142, %146 : vector<16x128xf32>
    %148 = arith.addf %141, %147 : vector<16x128xf32>
    %cst_59 = arith.constant 5.000000e-01 : f32
    %149 = vector.broadcast %cst_59 : f32 to vector<16x128xf32>
    %150 = arith.mulf %149, %148 : vector<16x128xf32>
    %151 = tpu.iota {dimensions = array<i32: 1>} : vector<16x128xi32>
    %c16_i32_60 = arith.constant 16 : i32
    %152 = vector.broadcast %c16_i32_60 : i32 to vector<16x128xi32>
    %153 = arith.cmpi slt, %151, %152 : vector<16x128xi32>
    %154 = vector.broadcast %5 : vector<16x1xi1> to vector<16x128xi1>
    %155 = arith.andi %154, %153 : vector<16x128xi1>
    %cst_61 = arith.constant 0.000000e+00 : f32
    %156 = vector.broadcast %cst_61 : f32 to vector<16x128xf32>
    %157 = arith.select %155, %150, %156 : vector<16x128xi1>, vector<16x128xf32>
    %158 = vector.shape_cast %157 : vector<16x128xf32> to vector<1x16x128xf32>
    %cst_62 = arith.constant dense<0.000000e+00> : vector<1xf32>
    %159 = vector.multi_reduction <add>, %158, %cst_62 [1, 2] : vector<1x16x128xf32> to vector<1xf32>
    %160 = vector.shape_cast %159 : vector<1xf32> to vector<1x1x1xf32>
    %161 = vector.extract %160[0, 0, 0] : f32 from vector<1x1x1xf32>
    %162 = tpu.iota {dimensions = array<i32: 1>} : vector<16x128xi32>
    %c16_i32_63 = arith.constant 16 : i32
    %163 = vector.broadcast %c16_i32_63 : i32 to vector<16x128xi32>
    %164 = arith.cmpi slt, %162, %163 : vector<16x128xi32>
    %cst_64 = arith.constant 0xFF800000 : f32
    %165 = vector.broadcast %cst_64 : f32 to vector<16x128xf32>
    %166 = arith.select %164, %129, %165 : vector<16x128xi1>, vector<16x128xf32>
    %cst_65 = arith.constant dense<0xFF800000> : vector<16xf32>
    %167 = vector.multi_reduction <maximumf>, %166, %cst_65 [1] : vector<16x128xf32> to vector<16xf32>
    %168 = vector.shape_cast %167 : vector<16xf32> to vector<16x1xf32>
    %169 = vector.broadcast %168 : vector<16x1xf32> to vector<16x128xf32>
    %170 = arith.subf %166, %169 : vector<16x128xf32>
    %171 = math.exp %170 : vector<16x128xf32>
    %cst_66 = arith.constant dense<0.000000e+00> : vector<16xf32>
    %172 = vector.multi_reduction <add>, %171, %cst_66 [1] : vector<16x128xf32> to vector<16xf32>
    %173 = vector.shape_cast %172 : vector<16xf32> to vector<16x1xf32>
    %174 = tpu.reciprocal %173 : vector<16x1xf32> -> vector<16x1xf32>
    %175 = vector.broadcast %174 : vector<16x1xf32> to vector<16x128xf32>
    %176 = arith.mulf %171, %175 : vector<16x128xf32>
    %c0_67 = arith.constant 0 : index
    %c0_68 = arith.constant 0 : index
    %177 = vector.load %arg11[%c0_67, %c0_68] : memref<16x128xf32, #tpu.memory_space<vmem>>, vector<16x128xf32>
    tpu.vector_store %arg11[%c0_67, %c0_68], %176 {strides = array<i32>} : memref<16x128xf32, #tpu.memory_space<vmem>>, vector<16x128xf32>,
    %178 = arith.addf %57, %109 : f32
    %179 = arith.addf %178, %161 : f32
    %180 = vector.broadcast %179 : f32 to vector<1x8x128xf32>
    %c0_69 = arith.constant 0 : index
    %c0_70 = arith.constant 0 : index
    %c0_71 = arith.constant 0 : index
    %181 = vector.load %arg12[%c0_69, %c0_70, %c0_71] : memref<1x8x128xf32, #tpu.memory_space<vmem>>, vector<1x8x128xf32>
    tpu.vector_store %arg12[%c0_69, %c0_70, %c0_71], %180 {strides = array<i32>} : memref<1x8x128xf32, #tpu.memory_space<vmem>>, vector<1x8x128xf32>,
    return
  }
  func.func @transform_0(%arg0: i32) -> (i32, i32) {
    %c0_i32 = arith.constant 0 : i32
    %c0_i32_0 = arith.constant 0 : i32
    return %arg0, %c0_i32 : i32, i32
  }
  func.func @transform_1(%arg0: i32) -> (i32, i32) {
    %c0_i32 = arith.constant 0 : i32
    %c0_i32_0 = arith.constant 0 : i32
    %c0_i32_1 = arith.constant 0 : i32
    return %c0_i32, %c0_i32_0 : i32, i32
  }
  func.func @transform_2(%arg0: i32) -> (i32, i32) {
    %c0_i32 = arith.constant 0 : i32
    %c0_i32_0 = arith.constant 0 : i32
    %c0_i32_1 = arith.constant 0 : i32
    return %c0_i32, %c0_i32_0 : i32, i32
  }
  func.func @transform_3(%arg0: i32) -> (i32, i32) {
    %c0_i32 = arith.constant 0 : i32
    %c0_i32_0 = arith.constant 0 : i32
    return %arg0, %c0_i32 : i32, i32
  }
  func.func @transform_4(%arg0: i32) -> (i32, i32) {
    %c0_i32 = arith.constant 0 : i32
    %c0_i32_0 = arith.constant 0 : i32
    %c0_i32_1 = arith.constant 0 : i32
    return %c0_i32, %c0_i32_0 : i32, i32
  }
  func.func @transform_5(%arg0: i32) -> (i32, i32) {
    %c0_i32 = arith.constant 0 : i32
    %c0_i32_0 = arith.constant 0 : i32
    %c0_i32_1 = arith.constant 0 : i32
    return %c0_i32, %c0_i32_0 : i32, i32
  }
  func.func @transform_6(%arg0: i32) -> (i32, i32) {
    %c0_i32 = arith.constant 0 : i32
    %c0_i32_0 = arith.constant 0 : i32
    return %arg0, %c0_i32 : i32, i32
  }
  func.func @transform_7(%arg0: i32) -> (i32, i32) {
    %c0_i32 = arith.constant 0 : i32
    %c0_i32_0 = arith.constant 0 : i32
    %c0_i32_1 = arith.constant 0 : i32
    return %c0_i32, %c0_i32_0 : i32, i32
  }
  func.func @transform_8(%arg0: i32) -> (i32, i32) {
    %c0_i32 = arith.constant 0 : i32
    %c0_i32_0 = arith.constant 0 : i32
    %c0_i32_1 = arith.constant 0 : i32
    return %c0_i32, %c0_i32_0 : i32, i32
  }
  func.func @transform_9(%arg0: i32) -> (i32, i32) {
    %c0_i32 = arith.constant 0 : i32
    %c0_i32_0 = arith.constant 0 : i32
    return %arg0, %c0_i32 : i32, i32
  }
  func.func @transform_10(%arg0: i32) -> (i32, i32) {
    %c0_i32 = arith.constant 0 : i32
    %c0_i32_0 = arith.constant 0 : i32
    return %arg0, %c0_i32 : i32, i32
  }
  func.func @transform_11(%arg0: i32) -> (i32, i32, i32) {
    %c0_i32 = arith.constant 0 : i32
    %c0_i32_0 = arith.constant 0 : i32
    %c0_i32_1 = arith.constant 0 : i32
    return %arg0, %c0_i32, %c0_i32_0 : i32, i32, i32
  }
}

</mosaic_0001>

<bundles_post_ra>
// kernel: mlp_forward.1
= control target key start
LH: loop header
LB: loop body
LE: loop exit
PB: predicated region body
PF: predicated region fallthrough
CT: control target
= control target key end

     0   :  { %v1337_v0 = vmov 0.0   ;;  %vm1338_vm0 = vmmov 0   ;;  %s1678_s1 = inlined_call_operand.vmem [shape: bf16[128,256], index: 1, kind: input, shape index: {}]   ;;  %s1679_s0 = inlined_call_operand.vmem [shape: bf16[16,128], index: 0, kind: input, shape index: {}]   ;;  %s1680_s4 = inlined_call_operand.vmem [shape: bf16[128,256], index: 4, kind: input, shape index: {}]   ;;  %s1681_s2 = inlined_call_operand.vmem [shape: f32[1,256], index: 2, kind: input, shape index: {}]   ;;  %s1682_s3 = inlined_call_operand.vmem [shape: bf16[16,128], index: 3, kind: input, shape index: {}]   ;;  %s1683_s7 = inlined_call_operand.vmem [shape: bf16[128,256], index: 7, kind: input, shape index: {}]   ;;  %s1684_s5 = inlined_call_operand.vmem [shape: f32[1,256], index: 5, kind: input, shape index: {}]   ;;  %s1685_s6 = inlined_call_operand.vmem [shape: bf16[16,128], index: 6, kind: input, shape index: {}]   ;;  %s1686_s8 = inlined_call_operand.vmem [shape: f32[1,256], index: 8, kind: input, shape index: {}]   ;;  %s1687_s9 = inlined_call_operand.vmem [shape: bf16[16,128], index: 9, kind: input, shape index: {}]   ;;  %s1688_s11 = inlined_call_operand.vmem [shape: f32[1,8,128], index: 11, kind: output, shape index: {1}]   ;;  %s1689_s10 = inlined_call_operand.vmem [shape: f32[16,128], index: 10, kind: output, shape index: {0}]  }
   0x1   :  { %1141 = vmatprep.subr.bf16.mxu1 %v1337_v0  ;;  %v1249_v1 = vld [vmem:[%s1678_s1 + $0x4] ss:$8 sps:$4 sm:$0xff]   ;;  %1121 = vmatprep.subr.bf16.mxu0 %v1337_v0  ;;  %v1250_v2 = vld [vmem:[%s1678_s1 + $0x14] ss:$8 sps:$4 sm:$0xff]   ;;  %v1253_v3 = vld [vmem:[%s1678_s1] ss:$8 sps:$4 sm:$0xff]  }
   0x2   :  { %1157 = vmatprep.mubr.msk.bf16.mxu1 %vm1338_vm0, %v1337_v0  ;;  %1137 = vmatprep.mubr.msk.bf16.mxu0 %vm1338_vm0, %v1337_v0  ;;  %v1251_v4 = vld [vmem:[%s1678_s1 + $0x24] ss:$8 sps:$4 sm:$0xff]   ;;  %v1255_v5 = vld [vmem:[%s1678_s1 + $0x10] ss:$8 sps:$4 sm:$0xff]   ;;  %v1252_v6 = vld [vmem:[%s1678_s1 + $0x34] ss:$8 sps:$4 sm:$0xff]  }
   0x3   :  { %1142 = vmatpush3.bf16.msra.mxu1 %v1249_v1  ;;  %1122 = vmatpush3.bf16.msra.mxu0 %v1253_v3  ;;  %v1257_v7 = vld [vmem:[%s1678_s1 + $0x20] ss:$8 sps:$4 sm:$0xff]   ;;  %v1254_v8 = vld [vmem:[%s1678_s1 + $0x44] ss:$8 sps:$4 sm:$0xff]   ;;  %v1259_v10 = vld [vmem:[%s1678_s1 + $0x30] ss:$8 sps:$4 sm:$0xff]  }
   0x4   :  { %1143 = vmatprep.subr.bf16.mxu1 %v1337_v0  ;;  %1123 = vmatprep.subr.bf16.mxu0 %v1337_v0  ;;  %v47_v9 = vld [vmem:[%s1679_s0] sm:$0xff]   ;;  %v1256_v12 = vld [vmem:[%s1678_s1 + $0x54] ss:$8 sps:$4 sm:$0xff]   ;;  %v1262_v17 = vld [vmem:[%s1678_s1 + $0x50] ss:$8 sps:$4 sm:$0xff]  }
   0x5   :  { %v49_v11 = vunpack.c.l.bf16 %v47_v9  ;;  %v1261_v13 = vld [vmem:[%s1678_s1 + $0x40] ss:$8 sps:$4 sm:$0xff]   ;;  %v50_v15 = vunpack.c.h.bf16 %v47_v9  ;;  %v1258_v16 = vld [vmem:[%s1678_s1 + $0x64] ss:$8 sps:$4 sm:$0xff]   ;;  %v1260_v19 = vld [vmem:[%s1678_s1 + $0x74] ss:$8 sps:$4 sm:$0xff]  }
   0x6   :  { %v1263_v20 = vld [vmem:[%s1678_s1 + $0x60] ss:$8 sps:$4 sm:$0xff]   ;;  %v1264_v22 = vld [vmem:[%s1678_s1 + $0x70] ss:$8 sps:$4 sm:$0xff]   ;;  %v1267_v24 = vld [vmem:[%s1680_s4 + $0x4] ss:$8 sps:$4 sm:$0xff]  }
   0x7   :  { %1144 = vmatpush3.bf16.msra.mxu1 %v1250_v2  ;;  %1124 = vmatpush3.bf16.msra.mxu0 %v1255_v5  ;;  %v51_v14 = vmul.f32 %v49_v11, %v49_v11  ;;  %v52_v18 = vmul.f32 %v50_v15, %v50_v15  ;;  %v1266_v23 = vld [vmem:[%s1680_s4] ss:$8 sps:$4 sm:$0xff]   ;;  %v1268_v25 = vld [vmem:[%s1680_s4 + $0x10] ss:$8 sps:$4 sm:$0xff]   ;;  %v1269_v26 = vld [vmem:[%s1680_s4 + $0x14] ss:$8 sps:$4 sm:$0xff]  }
   0x8   :  { %1145 = vmatprep.subr.bf16.mxu1 %v1337_v0  ;;  %1125 = vmatprep.subr.bf16.mxu0 %v1337_v0  ;;  %v1270_v27 = vld [vmem:[%s1680_s4 + $0x20] ss:$8 sps:$4 sm:$0xff]   ;;  %v1271_v28 = vld [vmem:[%s1680_s4 + $0x24] ss:$8 sps:$4 sm:$0xff]   ;;  %v1272_v29 = vld [vmem:[%s1680_s4 + $0x30] ss:$8 sps:$4 sm:$0xff]  }
   0x9   :  { %306 = vadd.xlane.f32.xlu0 %v51_v14  ;;  %v53_v21 = vpack.c.bf16 %v52_v18, %v51_v14  ;;  %v1273_v30 = vld [vmem:[%s1680_s4 + $0x34] ss:$8 sps:$4 sm:$0xff]   ;;  %v1274_v31 = vld [vmem:[%s1680_s4 + $0x40] ss:$8 sps:$4 sm:$0xff]   ;;  %v1275_v32 = vld [vmem:[%s1680_s4 + $0x44] ss:$8 sps:$4 sm:$0xff]  }
   0xa   :  { %v1276_v33 = vld [vmem:[%s1680_s4 + $0x50] ss:$8 sps:$4 sm:$0xff]   ;;  %v1277_v34 = vld [vmem:[%s1680_s4 + $0x54] ss:$8 sps:$4 sm:$0xff]   ;;  %v1278_v35 = vld [vmem:[%s1680_s4 + $0x60] ss:$8 sps:$4 sm:$0xff]  }
   0xb   :  { %1146 = vmatpush3.bf16.msra.mxu1 %v1251_v4  ;;  %1126 = vmatpush3.bf16.msra.mxu0 %v1257_v7  ;;  %v1279_v36 = vld [vmem:[%s1680_s4 + $0x64] ss:$8 sps:$4 sm:$0xff]   ;;  %v1280_v37 = vld [vmem:[%s1680_s4 + $0x70] ss:$8 sps:$4 sm:$0xff]   ;;  %v1281_v38 = vld [vmem:[%s1680_s4 + $0x74] ss:$8 sps:$4 sm:$0xff]  }
   0xc   :  { %1147 = vmatprep.subr.bf16.mxu1 %v1337_v0  ;;  %1127 = vmatprep.subr.bf16.mxu0 %v1337_v0  ;;  %v1004_v39 = vld [vmem:[%s1681_s2 + $0x1] ss:$0 sm:$0xff]  ;;  %v994_v52 = vld [vmem:[%s1681_s2] ss:$0 sm:$0xff]  ;;  %v1283_v14 = vld [vmem:[%s1683_s7 + $0x4] ss:$8 sps:$4 sm:$0xff]  }
   0xd   :  { %v1056_v50 = vld [vmem:[%s1682_s3] sm:$0xff]   ;;  %v1284_v15 = vld [vmem:[%s1683_s7 + $0x10] ss:$8 sps:$4 sm:$0xff]  }
   0xe   :  { %v1553_v55 = vunpack.c.l.bf16 %v1056_v50  ;;  %v1058_v57 = vunpack.c.h.bf16 %v1056_v50  ;;  %v1287_v18 = vld [vmem:[%s1683_s7 + $0x24] ss:$8 sps:$4 sm:$0xff]  }
   0xf   :  { %1148 = vmatpush3.bf16.msra.mxu1 %v1252_v6  ;;  %1128 = vmatpush3.bf16.msra.mxu0 %v1259_v10 }
  0x10   :  { %1149 = vmatprep.subr.bf16.mxu1 %v1337_v0  ;;  %1129 = vmatprep.subr.bf16.mxu0 %v1337_v0 }
  0x13   :  { %1150 = vmatpush3.bf16.msra.mxu1 %v1254_v8  ;;  %1130 = vmatpush3.bf16.msra.mxu0 %v1261_v13  ;;  %v1282_v13 = vld [vmem:[%s1683_s7] ss:$8 sps:$4 sm:$0xff]  }
  0x14   :  { %1151 = vmatprep.subr.bf16.mxu1 %v1337_v0  ;;  %1131 = vmatprep.subr.bf16.mxu0 %v1337_v0 }
  0x17   :  { %1152 = vmatpush3.bf16.msra.mxu1 %v1256_v12  ;;  %1132 = vmatpush3.bf16.msra.mxu0 %v1262_v17  ;;  %v1286_v17 = vld [vmem:[%s1683_s7 + $0x20] ss:$8 sps:$4 sm:$0xff]  }
  0x18   :  { %1153 = vmatprep.subr.bf16.mxu1 %v1337_v0  ;;  %1133 = vmatprep.subr.bf16.mxu0 %v1337_v0 }
  0x1b   :  { %1154 = vmatpush3.bf16.msra.mxu1 %v1258_v16  ;;  %1134 = vmatpush3.bf16.msra.mxu0 %v1263_v20  ;;  %v1285_v16 = vld [vmem:[%s1683_s7 + $0x14] ss:$8 sps:$4 sm:$0xff]  }
  0x1c   :  { %1155 = vmatprep.subr.bf16.mxu1 %v1337_v0  ;;  %1135 = vmatprep.subr.bf16.mxu0 %v1337_v0  ;;  %v1289_v20 = vld [vmem:[%s1683_s7 + $0x34] ss:$8 sps:$4 sm:$0xff]  }
  0x1f   :  { %1156 = vmatpush3.bf16.msra.mxu1 %v1260_v19  ;;  %1136 = vmatpush3.bf16.msra.mxu0 %v1264_v22  ;;  %v1288_v19 = vld [vmem:[%s1683_s7 + $0x30] ss:$8 sps:$4 sm:$0xff]   ;;  %v1291_v22 = vld [vmem:[%s1683_s7 + $0x44] ss:$8 sps:$4 sm:$0xff]  }
  0x20   :  { %1181 = vmatprep.subr.bf16.mxu1 %v1337_v0  ;;  %1161 = vmatprep.subr.bf16.mxu0 %v1337_v0 }
  0x22   :  { %1158 = vmatmul.mubr.bf16.vlgmr.msra.gmra.mrb[0].mxu1 %v53_v21  ;;  %1138 = vmatmul.mubr.bf16.vlgmr.msra.gmra.mrb[0].mxu0 %v47_v9  ;;  %v1290_v21 = vld [vmem:[%s1683_s7 + $0x40] ss:$8 sps:$4 sm:$0xff]  }
  0x23   :  { %1197 = vmatprep.mubr.msk.bf16.mxu1 %vm1338_vm0, %v1337_v0  ;;  %1177 = vmatprep.mubr.msk.bf16.mxu0 %vm1338_vm0, %v1337_v0 }
  0x24   :  { %1162 = vmatpush3.bf16.msra.mxu0 %v1266_v23  ;;  %1182 = vmatpush3.bf16.msra.mxu1 %v1267_v24  ;;  %v1292_v23 = vld [vmem:[%s1683_s7 + $0x50] ss:$8 sps:$4 sm:$0xff]   ;;  %v1293_v24 = vld [vmem:[%s1683_s7 + $0x54] ss:$8 sps:$4 sm:$0xff]  }
  0x25   :  { %1163 = vmatprep.subr.bf16.mxu0 %v1337_v0  ;;  %1183 = vmatprep.subr.bf16.mxu1 %v1337_v0 }
  0x28   :  { %1164 = vmatpush3.bf16.msra.mxu0 %v1268_v25  ;;  %1184 = vmatpush3.bf16.msra.mxu1 %v1269_v26  ;;  %v1294_v25 = vld [vmem:[%s1683_s7 + $0x60] ss:$8 sps:$4 sm:$0xff]   ;;  %v1295_v26 = vld [vmem:[%s1683_s7 + $0x64] ss:$8 sps:$4 sm:$0xff]  }
  0x29   :  { %1165 = vmatprep.subr.bf16.mxu0 %v1337_v0  ;;  %1185 = vmatprep.subr.bf16.mxu1 %v1337_v0 }
  0x2c   :  { %1166 = vmatpush3.bf16.msra.mxu0 %v1270_v27  ;;  %1186 = vmatpush3.bf16.msra.mxu1 %v1271_v28  ;;  %v1296_v27 = vld [vmem:[%s1683_s7 + $0x70] ss:$8 sps:$4 sm:$0xff]   ;;  %v1297_v28 = vld [vmem:[%s1683_s7 + $0x74] ss:$8 sps:$4 sm:$0xff]  }
  0x2d   :  { %1167 = vmatprep.subr.bf16.mxu0 %v1337_v0  ;;  %1187 = vmatprep.subr.bf16.mxu1 %v1337_v0 }
  0x30   :  { %1168 = vmatpush3.bf16.msra.mxu0 %v1272_v29  ;;  %1188 = vmatpush3.bf16.msra.mxu1 %v1273_v30  ;;  %v1024_v30 = vld [vmem:[%s1684_s5 + $0x1] ss:$0 sm:$0xff] }
  0x31   :  { %1169 = vmatprep.subr.bf16.mxu0 %v1337_v0  ;;  %1189 = vmatprep.subr.bf16.mxu1 %v1337_v0 }
  0x34   :  { %1170 = vmatpush3.bf16.msra.mxu0 %v1274_v31  ;;  %1190 = vmatpush3.bf16.msra.mxu1 %v1275_v32 }
  0x35   :  { %1171 = vmatprep.subr.bf16.mxu0 %v1337_v0  ;;  %1191 = vmatprep.subr.bf16.mxu1 %v1337_v0 }
  0x38   :  { %1172 = vmatpush3.bf16.msra.mxu0 %v1276_v33  ;;  %1192 = vmatpush3.bf16.msra.mxu1 %v1277_v34 }
  0x39   :  { %1173 = vmatprep.subr.bf16.mxu0 %v1337_v0  ;;  %1193 = vmatprep.subr.bf16.mxu1 %v1337_v0 }
  0x3c   :  { %1174 = vmatpush3.bf16.msra.mxu0 %v1278_v35  ;;  %1194 = vmatpush3.bf16.msra.mxu1 %v1279_v36 }
  0x3d   :  { %1175 = vmatprep.subr.bf16.mxu0 %v1337_v0  ;;  %1195 = vmatprep.subr.bf16.mxu1 %v1337_v0 }
  0x40   :  { %1176 = vmatpush3.bf16.msra.mxu0 %v1280_v37  ;;  %1196 = vmatpush3.bf16.msra.mxu1 %v1281_v38 }
  0x41   :  { %1201 = vmatprep.subr.bf16.mxu0 %v1337_v0  ;;  %1221 = vmatprep.subr.bf16.mxu1 %v1337_v0 }
  0xf5   :  { %v281_v40 = vpop.f32.mrb[0].mxu1  ;;  %v186_v46 = vpop.f32.mrb[0].mxu0 }
  0xf6   :  { %v1543_v41 = vadd.f32 %v1004_v39, %v281_v40  ;;  %v1159_v42 = vpop.f32.mrb[1].mxu1  ;;  %v1139_v47 = vpop.f32.mrb[1].mxu0  ;;  %v187_v58 = vadd.f32 %v994_v52, %v186_v46 }
  0xf7   :  { %v284_v43 = vpop.f32.mrb[2].mxu1  ;;  %v189_v48 = vpop.f32.mrb[2].mxu0 }
  0xf8   :  { %v285_v44 = vadd.f32 %v1004_v39, %v284_v43  ;;  %v1160_v45 = vpop.f32.mrb[3].mxu1  ;;  %1299 = vrsqrt.f32 %v1543_v41  ;;  %v1140_v49 = vpop.f32.mrb[3].mxu0  ;;  %vm290_vm1 = vcmp.eq.f32.partialorder %v1543_v41, inf  ;;  %v293_v56 = vand.u32 2147483648, %v1543_v41  ;;  %v1060_v39 = vld [vmem:[%s1685_s6] sm:$0xff]  }
  0xf9   :  { %vm292_vm2 = vcmp.eq.f32.partialorder %v1543_v41, 0.0  ;;  %v190_v4 = vadd.f32 %v994_v52, %v189_v48  ;;  %v1639_v45 = vunpack.c.l.bf16 %v1060_v39  ;;  %v1062_v47 = vunpack.c.h.bf16 %v1060_v39 }
  0xfa   :  { %1301 = vrsqrt.f32 %v285_v44  ;;  %vm297_vm3 = vcmp.eq.f32.partialorder %v285_v44, inf  ;;  %v300_v62 = vand.u32 2147483648, %v285_v44  ;;  %vm299_vm4 = vcmp.eq.f32.partialorder %v285_v44, 0.0 }
 0x102   :  { %v1300_v51 = vpop.eup %1299 }
 0x103   :  { %v289_v53 = vmul.f32 %v1300_v51, %v1543_v41 }
 0x104   :  { %v1302_v54 = vpop.eup %1301 }
 0x105   :  { %v291_v59 = vsel %vm290_vm1, %v1543_v41, %v289_v53  ;;  %v296_v60 = vmul.f32 %v1302_v54, %v285_v44 }
 0x106   :  { %v294_v61 = vsel %vm292_vm2, %v293_v56, %v291_v59 }
 0x107   :  { %v302_v63 = vmul.f32 %v1553_v55, %v294_v61  ;;  %v298_v1 = vsel %vm297_vm3, %v285_v44, %v296_v60  ;;  %v1015_v44 = vld [vmem:[%s1684_s5] ss:$0 sm:$0xff] }
 0x108   :  { %v301_v2 = vsel %vm299_vm4, %v300_v62, %v298_v1 }
 0x109   :  { %v304_v3 = vadd.f32 %v302_v63, %v187_v58  ;;  %v303_v5 = vmul.f32 %v1058_v57, %v301_v2 }
 0x10b   :  { %v361_v6 = vmax.f32 %v304_v3, 0.0  ;;  %v305_v7 = vadd.f32 %v303_v5, %v190_v4  ;;  %v307_v4 = vpop.xlane.xlu0 %306 }
 0x10c   :  { %v310_v5 = vmul.f32 0.0023607307, %v307_v4 }
 0x10d   :  { %v362_v8 = vmax.f32 %v305_v7, 0.0  ;;  %v364_v9 = vmul.f32 %v361_v6, %v361_v6 }
 0x10e   :  { %v312_v7 = vadd.f32 0.0023607307, %v310_v5 }
 0x10f   :  { %v363_v10 = vpack.c.bf16 %v362_v8, %v361_v6  ;;  %v365_v11 = vmul.f32 %v362_v8, %v362_v8  ;;  %613 = vadd.xlane.f32.xlu0 %v364_v9 }
 0x111   :  { %v366_v12 = vpack.c.bf16 %v365_v11, %v364_v9  ;;  %1178 = vmatmul.mubr.bf16.vlgmr.msra.gmra.mrb[4].mxu0 %v363_v10 }
 0x112   :  { %1217 = vmatprep.mubr.msk.bf16.mxu0 %vm1338_vm0, %v1337_v0  ;;  %1202 = vmatpush3.bf16.msra.mxu0 %v1282_v13 }
 0x113   :  { %1198 = vmatmul.mubr.bf16.vlgmr.msra.gmra.mrb[4].mxu1 %v366_v12  ;;  %1203 = vmatprep.subr.bf16.mxu0 %v1337_v0 }
 0x114   :  { %1237 = vmatprep.mubr.msk.bf16.mxu1 %vm1338_vm0, %v1337_v0  ;;  %1222 = vmatpush3.bf16.msra.mxu1 %v1283_v14  ;;  %v1044_v14 = vld [vmem:[%s1686_s8 + $0x1] ss:$0 sm:$0xff] }
 0x115   :  { %1223 = vmatprep.subr.bf16.mxu1 %v1337_v0 }
 0x116   :  { %1204 = vmatpush3.bf16.msra.mxu0 %v1284_v15 }
 0x117   :  { %1205 = vmatprep.subr.bf16.mxu0 %v1337_v0 }
 0x118   :  { %1224 = vmatpush3.bf16.msra.mxu1 %v1285_v16 }
 0x119   :  { %1225 = vmatprep.subr.bf16.mxu1 %v1337_v0 }
 0x11a   :  { %1206 = vmatpush3.bf16.msra.mxu0 %v1286_v17 }
 0x11b   :  { %1207 = vmatprep.subr.bf16.mxu0 %v1337_v0 }
 0x11c   :  { %1226 = vmatpush3.bf16.msra.mxu1 %v1287_v18 }
 0x11d   :  { %1227 = vmatprep.subr.bf16.mxu1 %v1337_v0 }
 0x11e   :  { %1208 = vmatpush3.bf16.msra.mxu0 %v1288_v19 }
 0x11f   :  { %1209 = vmatprep.subr.bf16.mxu0 %v1337_v0 }
 0x120   :  { %1228 = vmatpush3.bf16.msra.mxu1 %v1289_v20 }
 0x121   :  { %1229 = vmatprep.subr.bf16.mxu1 %v1337_v0 }
 0x122   :  { %1210 = vmatpush3.bf16.msra.mxu0 %v1290_v21 }
 0x123   :  { %1211 = vmatprep.subr.bf16.mxu0 %v1337_v0 }
 0x124   :  { %1230 = vmatpush3.bf16.msra.mxu1 %v1291_v22 }
 0x125   :  { %1231 = vmatprep.subr.bf16.mxu1 %v1337_v0 }
 0x126   :  { %1212 = vmatpush3.bf16.msra.mxu0 %v1292_v23 }
 0x127   :  { %1213 = vmatprep.subr.bf16.mxu0 %v1337_v0 }
 0x128   :  { %1232 = vmatpush3.bf16.msra.mxu1 %v1293_v24 }
 0x129   :  { %1233 = vmatprep.subr.bf16.mxu1 %v1337_v0 }
 0x12a   :  { %1214 = vmatpush3.bf16.msra.mxu0 %v1294_v25 }
 0x12b   :  { %1215 = vmatprep.subr.bf16.mxu0 %v1337_v0 }
 0x12c   :  { %1234 = vmatpush3.bf16.msra.mxu1 %v1295_v26 }
 0x12d   :  { %1235 = vmatprep.subr.bf16.mxu1 %v1337_v0 }
 0x12e   :  { %1216 = vmatpush3.bf16.msra.mxu0 %v1296_v27 }
 0x130   :  { %1236 = vmatpush3.bf16.msra.mxu1 %v1297_v28 }
 0x19c   :  { %v614_v6 = vpop.xlane.xlu0 %613 }
 0x19d   :  { %v617_v8 = vmul.f32 0.0023607307, %v614_v6 }
 0x19f   :  { %v619_v9 = vadd.f32 0.0023607307, %v617_v8 }
 0x1e4   :  { %v493_v29 = vpop.f32.mrb[4].mxu0 }
 0x1e5   :  { %v1179_v31 = vpop.f32.mrb[5].mxu0  ;;  %v494_v52 = vadd.f32 %v1015_v44, %v493_v29 }
 0x1e6   :  { %v496_v32 = vpop.f32.mrb[6].mxu0  ;;  %v588_v33 = vpop.f32.mrb[4].mxu1 }
 0x1e7   :  { %v1629_v34 = vadd.f32 %v1024_v30, %v588_v33  ;;  %v1180_v35 = vpop.f32.mrb[7].mxu0  ;;  %v1199_v36 = vpop.f32.mrb[5].mxu1  ;;  %v497_v57 = vadd.f32 %v1015_v44, %v496_v32  ;;  %v1064_v33 = vld [vmem:[%s1687_s9] sm:$0xff]  }
 0x1e8   :  { %v591_v37 = vpop.f32.mrb[6].mxu1  ;;  %v328_v35 = vmul.f32 %v1553_v55, %v1553_v55 }
 0x1e9   :  { %v592_v0 = vadd.f32 %v1024_v30, %v591_v37  ;;  %v1200_v38 = vpop.f32.mrb[7].mxu1  ;;  %1303 = vrsqrt.f32 %v1629_v34  ;;  %vm597_vm5 = vcmp.eq.f32.partialorder %v1629_v34, inf  ;;  %v600_v46 = vand.u32 2147483648, %v1629_v34 }
 0x1ea   :  { %vm599_vm6 = vcmp.eq.f32.partialorder %v1629_v34, 0.0 }
 0x1eb   :  { %1305 = vrsqrt.f32 %v592_v0  ;;  %vm604_vm7 = vcmp.eq.f32.partialorder %v592_v0, inf  ;;  %v607_v51 = vand.u32 2147483648, %v592_v0  ;;  %vm606_vm8 = vcmp.eq.f32.partialorder %v592_v0, 0.0 }
 0x1ec   :  { %1307 = vrcp.f32 %v312_v7 }
 0x1ed   :  { %1309 = vlog2.f32 %v312_v7 }
 0x1ee   :  { %1311 = vlog2.f32 %v1543_v41 }
 0x1ef   :  { %1313 = vrcp.f32 %v619_v9 }
 0x1f0   :  { %1315 = vlog2.f32 %v1629_v34 }
 0x1f1   :  { %1317 = vlog2.f32 %v619_v9 }
 0x1f3   :  { %v1304_v40 = vpop.eup %1303 }
 0x1f4   :  { %v596_v42 = vmul.f32 %v1304_v40, %v1629_v34  ;;  %v1065_v40 = vunpack.c.l.bf16 %v1064_v33 }
 0x1f5   :  { %v1306_v43 = vpop.eup %1305 }
 0x1f6   :  { %v598_v48 = vsel %vm597_vm5, %v1629_v34, %v596_v42  ;;  %v603_v49 = vmul.f32 %v1306_v43, %v592_v0  ;;  %v1308_v16 = vpop.eup %1307 }
 0x1f7   :  { %v601_v50 = vsel %vm599_vm6, %v600_v46, %v598_v48  ;;  %v1310_v19 = vpop.eup %1309  ;;  %v330_v27 = vmul.f32 %v1308_v16, %v1543_v41  ;;  %v635_v41 = vmul.f32 %v1639_v45, %v1639_v45 }
 0x1f8   :  { %v609_v53 = vmul.f32 %v1639_v45, %v601_v50  ;;  %v605_v54 = vsel %vm604_vm7, %v592_v0, %v603_v49  ;;  %v1312_v23 = vpop.eup %1311  ;;  %v319_v29 = vmul.f32 0.6931472, %v1310_v19  ;;  %v340_v0 = vlaneseq }
 0x1f9   :  { %v608_v56 = vsel %vm606_vm8, %v607_v51, %v605_v54  ;;  %v1314_v28 = vpop.eup %1313  ;;  %v323_v30 = vmul.f32 0.6931472, %v1312_v23  ;;  %v1013_v36 = vadd.f32 -1.0, %v330_v27  ;;  %v1066_v54 = vunpack.c.h.bf16 %v1064_v33 }
 0x1fa   :  { %v611_v58 = vadd.f32 %v609_v53, %v494_v52  ;;  %v610_v59 = vmul.f32 %v1062_v47, %v608_v56  ;;  %v637_v31 = vmul.f32 %v1314_v28, %v1629_v34  ;;  %v1316_v32 = vpop.eup %1315  ;;  %v341_v49 = vand.u32 127, %v340_v0  ;;  %v1035_v52 = vld [vmem:[%s1686_s8] ss:$0 sm:$0xff] }
 0x1fb   :  { %v1318_v37 = vpop.eup %1317  ;;  %v326_v38 = vsub.f32 %v319_v29, %v323_v30  ;;  %v630_v42 = vmul.f32 0.6931472, %v1316_v32  ;;  %v334_v34 = vmul.f32 %v1013_v36, %v328_v35  ;;  %v933_v56 = vmul.f32 %v1065_v40, %v1065_v40 }
 0x1fc   :  { %v659_v60 = vmax.f32 %v611_v58, 0.0  ;;  %v612_v61 = vadd.f32 %v610_v59, %v497_v57  ;;  %v1033_v39 = vadd.f32 -1.0, %v637_v31  ;;  %v626_v46 = vmul.f32 0.6931472, %v1318_v37 }
 0x1fd   :  { %v336_v50 = vadd.f32 %v334_v34, %v326_v38  ;;  %vm945_vm13 = vcmp.lt.s32.totalorder %v341_v49, 16  ;;  %vm342_vm14 = vcmp.lt.s32.totalorder %v341_v49, 32 }
 0x1fe   :  { %v662_v62 = vmul.f32 %v659_v60, %v659_v60  ;;  %v660_v63 = vmax.f32 %v612_v61, 0.0  ;;  %v641_v51 = vmul.f32 %v1033_v39, %v635_v41  ;;  %v633_v45 = vsub.f32 %v626_v46, %v630_v42 }
 0x1ff   :  { %v338_v16 = vmul.f32 0.5, %v336_v50 }
 0x200   :  { %911 = vadd.xlane.f32.xlu1 %v662_v62  ;;  %v661_v1 = vpack.c.bf16 %v660_v63, %v659_v60  ;;  %v663_v2 = vmul.f32 %v660_v63, %v660_v63  ;;  %v643_v8 = vadd.f32 %v641_v51, %v633_v45 }
 0x202   :  { %v664_v3 = vpack.c.bf16 %v663_v2, %v662_v62  ;;  %1218 = vmatmul.mubr.bf16.vlgmr.msra.gmra.mrb[8].mxu0 %v661_v1  ;;  %v645_v19 = vmul.f32 0.5, %v643_v8 }
 0x204   :  { %1238 = vmatmul.mubr.bf16.vlgmr.msra.gmra.mrb[8].mxu1 %v664_v3 }
 0x28d   :  { %v912_v10 = vpop.xlane.xlu1 %911 }
 0x28e   :  { %v915_v11 = vmul.f32 0.0023607307, %v912_v10 }
 0x290   :  { %v917_v12 = vadd.f32 0.0023607307, %v915_v11 }
 0x292   :  { %1319 = vrcp.f32 %v917_v12 }
 0x293   :  { %1321 = vlog2.f32 %v917_v12 }
 0x29c   :  { %v1320_v43 = vpop.eup %1319 }
 0x29d   :  { %v1322_v44 = vpop.eup %1321 }
 0x29e   :  { %v924_v58 = vmul.f32 0.6931472, %v1322_v44 }
 0x2d5   :  { %v791_v13 = vpop.f32.mrb[8].mxu0 }
 0x2d6   :  { %v1219_v15 = vpop.f32.mrb[9].mxu0  ;;  %v792_v1 = vadd.f32 %v1035_v52, %v791_v13 }
 0x2d7   :  { %v1651_v17 = vpop.f32.mrb[10].mxu0  ;;  %v886_v18 = vpop.f32.mrb[8].mxu1 }
 0x2d8   :  { %v887_v20 = vadd.f32 %v1044_v14, %v886_v18  ;;  %v1220_v21 = vpop.f32.mrb[11].mxu0  ;;  %v1239_v22 = vpop.f32.mrb[9].mxu1  ;;  %v795_v9 = vadd.f32 %v1035_v52, %v1651_v17 }
 0x2d9   :  { %v889_v24 = vpop.f32.mrb[10].mxu1  ;;  %v647_v22 = vsel %vm342_vm14, %v645_v19, 0.0 }
 0x2da   :  { %v890_v25 = vadd.f32 %v1044_v14, %v889_v24  ;;  %v1240_v26 = vpop.f32.mrb[11].mxu1  ;;  %1323 = vrsqrt.f32 %v887_v20  ;;  %v935_v47 = vmul.f32 %v1320_v43, %v887_v20  ;;  %vm895_vm9 = vcmp.eq.f32.partialorder %v887_v20, inf }
 0x2db   :  { %1325 = vlog2.f32 %v887_v20  ;;  %v898_v59 = vand.u32 2147483648, %v887_v20  ;;  %vm897_vm10 = vcmp.eq.f32.partialorder %v887_v20, 0.0 }
 0x2dc   :  { %1327 = vrsqrt.f32 %v890_v25  ;;  %v1053_v63 = vadd.f32 -1.0, %v935_v47  ;;  %vm902_vm11 = vcmp.eq.f32.partialorder %v890_v25, inf  ;;  %v905_v3 = vand.u32 2147483648, %v890_v25 }
 0x2dd   :  { %vm904_vm12 = vcmp.eq.f32.partialorder %v890_v25, 0.0 }
 0x2de   :  { %v939_v12 = vmul.f32 %v1053_v63, %v933_v56 }
 0x2e4   :  { %v1324_v48 = vpop.eup %1323 }
 0x2e5   :  { %v1326_v55 = vpop.eup %1325  ;;  %v894_v53 = vmul.f32 %v1324_v48, %v887_v20 }
 0x2e6   :  { %v1328_v57 = vpop.eup %1327  ;;  %v928_v60 = vmul.f32 0.6931472, %v1326_v55 }
 0x2e7   :  { %v896_v61 = vsel %vm895_vm9, %v887_v20, %v894_v53  ;;  %v901_v62 = vmul.f32 %v1328_v57, %v890_v25  ;;  %v349_v20 = vsel %vm342_vm14, %v338_v16, 0.0 }
 0x2e8   :  { %v899_v2 = vsel %vm897_vm10, %v898_v59, %v896_v61  ;;  %v931_v6 = vsub.f32 %v924_v58, %v928_v60 }
 0x2e9   :  { %v907_v4 = vmul.f32 %v1065_v40, %v899_v2  ;;  %v903_v5 = vsel %vm902_vm11, %v890_v25, %v901_v62 }
 0x2ea   :  { %v906_v7 = vsel %vm904_vm12, %v905_v3, %v903_v5  ;;  %v941_v13 = vadd.f32 %v939_v12, %v931_v6 }
 0x2eb   :  { %v909_v10 = vadd.f32 %v907_v4, %v792_v1  ;;  %v908_v11 = vmul.f32 %v1066_v54, %v906_v7 }
 0x2ec   :  { %v943_v21 = vmul.f32 0.5, %v941_v13 }
 0x2ed   :  { %v960_v14 = vsel %vm945_vm13, %v909_v10, -inf  ;;  %v910_v15 = vadd.f32 %v908_v11, %v795_v9 }
 0x2ee   :  { %962 = vmax.xlane.f32.xlu1 %v960_v14  ;;  %v948_v17 = vsel %vm945_vm13, %v943_v21, 0.0 }
 0x2ef   :  { %v961_v18 = vsel %vm945_vm13, %v910_v15, -inf }
 0x2f0   :  { %964 = vmax.xlane.f32.xlu0 %v961_v18 }
 0x2f2   :  { %352 = vadd.xlane.f32.xlu1 %v349_v20 }
 0x2f4   :  { %650 = vadd.xlane.f32.xlu0 %v647_v22 }
 0x2f6   :  { %951 = vadd.xlane.f32.xlu1 %v948_v17 }
 0x37b   :  { %v963_v23 = vpop.xlane.xlu1 %962 }
 0x37c   :  { %v966_v24 = vsub.f32 %v960_v14, %v963_v23 }
 0x37d   :  { %v965_v25 = vpop.xlane.xlu0 %964 }
 0x37e   :  { %v968_v26 = vmul.f32 1.442695, %v966_v24  ;;  %v967_v27 = vsub.f32 %v961_v18, %v965_v25 }
 0x37f   :  { %v353_v28 = vpop.xlane.xlu1 %352 }
 0x380   :  { %1329 = vpow2.f32 %v968_v26  ;;  %v970_v29 = vmul.f32 1.442695, %v967_v27  ;;  %v354_v30 = vrot.slane %v353_v28, 4 }
 0x381   :  { %v651_v31 = vpop.xlane.xlu0 %650 }
 0x382   :  { %1331 = vpow2.f32 %v970_v29  ;;  %v355_v32 = vadd.f32 %v354_v30, %v353_v28  ;;  %v652_v33 = vrot.slane %v651_v31, 4 }
 0x383   :  { %v952_v35 = vpop.xlane.xlu1 %951 }
 0x384   :  { %v356_v36 = vrot.slane %v355_v32, 2  ;;  %v653_v37 = vadd.f32 %v652_v33, %v651_v31  ;;  %v953_v0 = vrot.slane %v952_v35, 4 }
 0x386   :  { %v654_v38 = vrot.slane %v653_v37, 2  ;;  %v954_v41 = vadd.f32 %v953_v0, %v952_v35  ;;  %v357_v39 = vadd.f32 %v356_v36, %v355_v32 }
 0x388   :  { %v955_v40 = vrot.slane %v954_v41, 2  ;;  %v358_v42 = vrot.slane %v357_v39, 1  ;;  %v655_v43 = vadd.f32 %v654_v38, %v653_v37 }
 0x38a   :  { %v1330_v34 = vpop.eup %1329  ;;  %v359_v44 = vadd.f32 %v358_v42, %v357_v39  ;;  %v656_v46 = vrot.slane %v655_v43, 1  ;;  %v956_v47 = vadd.f32 %v955_v40, %v954_v41 }
 0x38b   :  { %972 = vadd.xlane.f32.xlu0 %v1330_v34 }
 0x38c   :  { %v1332_v48 = vpop.eup %1331  ;;  %1241 = vpush %v359_v44  ;;  %v657_v49 = vadd.f32 %v656_v46, %v655_v43  ;;  %v957_v50 = vrot.slane %v956_v47, 1 }
 0x38d   :  { %974 = vadd.xlane.f32.xlu1 %v1332_v48 }
 0x38e   :  { %1243 = vpush %v657_v49  ;;  %v958_v51 = vadd.f32 %v957_v50, %v956_v47 }
 0x390   :  { %1245 = vpush %v958_v51 }
 0x3bd   :  { %s1242_s8 = spop %1241 }
 0x3bf   :  { %s1244_s20 = spop %1243 }
 0x3c0   :  { %s982_s21 = sadd.f32 %s1244_s20, %s1242_s8 }
 0x3c1   :  { %s1246_s0 = spop %1245 }
 0x3c2   :  { %s983_s22 = sadd.f32 %s1246_s0, %s982_s21 }
 0x3c4   :  { %v984_v55 = vstv %s983_s22 }
 0x3c5   :  { %985 = vst [vmem:[%s1688_s11] sm:$0xff] %v984_v55 }
 0x418   :  { %v973_v52 = vpop.xlane.xlu0 %972 }
 0x419   :  { %1333 = vrcp.f32 %v973_v52 }
 0x41a   :  { %v975_v53 = vpop.xlane.xlu1 %974 }
 0x41b   :  { %1335 = vrcp.f32 %v975_v53 }
 0x423   :  { %v1334_v54 = vpop.eup %1333 }
 0x424   :  { %v978_v45 = vmul.f32 %v1334_v54, %v1330_v34 }
 0x425   :  { %v1336_v56 = vpop.eup %1335 }
 0x426   :  { %980 = vst [vmem:[%s1689_s10] sm:$0xff] %v978_v45  ;;  %v979_v57 = vmul.f32 %v1336_v56, %v1332_v48 }
 0x428   :  { %981 = vst [vmem:[%s1689_s10 + $0x8] sm:$0xff] %v979_v57 }

</bundles_post_ra>
